<compile_context>
chip_gen: v7x
topology: tpu7x:2x2x1
jax: 0.10.0
libtpu: 0.0.40
codegen_flags: <defaults>
</compile_context>

<pallas_src>
import jax
import jax.numpy as jnp
from jax.experimental import pallas as pl
from jax.experimental.pallas import tpu as pltpu


def _mlp_kernel(x_ref, w_ref, b_ref, o_ref):
    # x_ref: (TB, D) compute_dtype; w_ref: (1, D) f32; b_ref: (1, 1) f32;
    # o_ref: (TB, 1) f32.
    xf = x_ref[...].astype(jnp.float32)            # VPU cast (no-op for f32)
    prod = xf * w_ref[...]                         # broadcast (1, D) over rows
    o_ref[...] = jnp.sum(prod, axis=-1, keepdims=True) + b_ref[...]


def _round_up(x, m):
    return (x + m - 1) // m * m


def _fold_all(params):
    """Fold the entire MLP (affine at eval) into one (D, 1) weight + (1, 1) bias."""
    w_acc = params[0][0].astype(jnp.float32)
    b_acc = params[0][1].astype(jnp.float32)
    for w, b in params[1:]:
        w = w.astype(jnp.float32)
        w_acc = w_acc @ w
        b_acc = b_acc @ w + b.astype(jnp.float32)
    return w_acc, b_acc                            # (D, 1), (1, 1)


def mlp_forward(x, params, *, tile_b=1024, compute_dtype=jnp.float32):
    """x: (B, D) float32.  params: list of (W, b) with W (in, out), b (1, out)."""
    B, D = x.shape
    w_full, b_full = _fold_all(params)             # (D, 1), (1, 1)
    n_out = w_full.shape[1]                        # 1
    w_row = w_full.T                               # (1, D): lane-dense in VMEM

    isz = jnp.dtype(compute_dtype).itemsize
    # bf16 packs 2 rows/sublane, 8-bit packs 4: align the batch tile accordingly.
    align = 8 * max(1, 4 // isz)

    # Cap the batch tile so the per-tile footprint stays well inside v7x VMEM.
    per_row = 2 * D * isz + D * 4 + 2 * 4
    tile_cap = max(align, ((24 << 20) // per_row) // align * align)

    tile_b = max(align, min(_round_up(tile_b, align), _round_up(B, align), tile_cap))
    # v7x has 2 TensorCores: prefer >= 2 grid steps so "parallel" can shard.
    if B <= tile_b and B >= 2 * align:
        tile_b = _round_up(pl.cdiv(B, 2), align)

    B_pad = _round_up(B, tile_b)
    if B_pad != B:
        x = jnp.pad(x, ((0, B_pad - B), (0, 0)))

    x = x.astype(compute_dtype)                    # halves x DMA bytes when bf16
    grid = (B_pad // tile_b,)

    # VMEM budget (accounts for default 2x buffering of every input block).
    needed = (2 * tile_b * D * isz                 # x tile, double-buffered
              + tile_b * D * 4                     # f32 product intermediate
              + 2 * (D * 4 + 4)                    # w_row / bias (2x buffered)
              + 2 * tile_b * 4)                    # out tile, double-buffered
    try:
        vmem_cap = pltpu.get_tpu_info().vmem_capacity_bytes
    except Exception:  # pragma: no cover - conservative fallback (v7x per-TC)
        vmem_cap = 64 << 20
    vmem_limit = int(min(max(needed + (4 << 20), 16 << 20), (vmem_cap * 3) // 4))

    cost = pl.CostEstimate(
        flops=2 * B_pad * D,
        transcendentals=0,
        bytes_accessed=B_pad * D * isz + D * 4 + 4 + B_pad * n_out * 4)

    out = pl.pallas_call(
        _mlp_kernel,
        out_shape=jax.ShapeDtypeStruct((B_pad, n_out), jnp.float32),
        grid=grid,
        in_specs=[
            pl.BlockSpec((tile_b, D), lambda i: (i, 0)),   # x tile (pipelined)
            pl.BlockSpec((1, D), lambda i: (0, 0)),        # folded weight (resident)
            pl.BlockSpec((1, n_out), lambda i: (0, 0)),    # folded bias (resident)
        ],
        out_specs=pl.BlockSpec((tile_b, n_out), lambda i: (i, 0)),
        compiler_params=pltpu.CompilerParams(
            dimension_semantics=("parallel",),
            vmem_limit_bytes=vmem_limit),
        cost_estimate=cost,
    )(x, w_row, b_full)

    return out[:B]


def init_params(key, input_size):
    """Deterministic init mimicking nn.Linear default (uniform +-1/sqrt(fan_in))."""
    dims = [input_size, 1024, 128, 64, 16, 1]
    params = []
    for i in range(len(dims) - 1):
        fan_in, fan_out = dims[i], dims[i + 1]
        key, kw, kb = jax.random.split(key, 3)
        bound = 1.0 / jnp.sqrt(fan_in)
        w = jax.random.uniform(kw, (fan_in, fan_out), jnp.float32, -bound, bound)
        b = jax.random.uniform(kb, (1, fan_out), jnp.float32, -bound, bound)
        params.append((w, b))
    return params


def mlp_reference(x, params):
    h = x
    for w, b in params:
        h = h @ w + b
    return h


if __name__ == "__main__":
    key = jax.random.PRNGKey(0)
    B, D = 8, 32  # small input_size; hidden sizes (1024/128/64/16/1) fixed by module
    key, kx = jax.random.split(key)
    x = jax.random.normal(kx, (B, D), jnp.float32)
    params = init_params(key, D)
    ref = mlp_reference(x, params)

    # f32 path (exact forward semantics up to fold associativity).
    out = jax.block_until_ready(mlp_forward(x, params))
    assert out.shape == (B, 1)
    assert jnp.allclose(out, ref, atol=1e-4, rtol=1e-4), (out, ref)

    # bf16 input path (halves the only large HBM stream; f32 weights/accumulate).
    out_bf16 = jax.block_until_ready(
        mlp_forward(x, params, compute_dtype=jnp.bfloat16))
    assert out_bf16.shape == (B, 1)
    assert jnp.allclose(out_bf16, ref, atol=2e-2, rtol=2e-2), (out_bf16, ref)

    # Larger, non-multiple-of-tile batch to exercise the grid + padding path
    # (and the >=2-grid-step split for v7x megacore).
    key, kx2 = jax.random.split(key)
    x2 = jax.random.normal(kx2, (300, D), jnp.float32)
    out2 = jax.block_until_ready(mlp_forward(x2, params, tile_b=128))
    ref2 = mlp_reference(x2, params)
    assert out2.shape == (300, 1)
    assert jnp.allclose(out2, ref2, atol=1e-4, rtol=1e-4)

    # Default (large-tile) path on the same batch.
    out3 = jax.block_until_ready(mlp_forward(x2, params))
    assert out3.shape == (300, 1)
    assert jnp.allclose(out3, ref2, atol=1e-4, rtol=1e-4)

    print("KERNEL_OK")
</pallas_src>

<mosaic_0001>
module attributes {stable_mosaic.version = 11 : i64} {
  func.func @_mlp_kernel(%arg0: i32, %arg1: memref<8x32xf32, #tpu.memory_space<vmem>>, %arg2: memref<1x32xf32, #tpu.memory_space<vmem>>, %arg3: memref<1x1xf32, #tpu.memory_space<vmem>>, %arg4: memref<8x1xf32, #tpu.memory_space<vmem>>) attributes {dimension_semantics = [#tpu.dimension_semantics<parallel>], iteration_bounds = array<i64: 1>, scalar_prefetch = 0 : i64, scratch_operands = 0 : i64, tpu.core_type = #tpu.core_type<tc>, window_params = [{transform_indices = @transform_0, window_bounds = array<i64: 8, 32>}, {pipeline_mode = #tpu.pipeline_mode<synchronous>, transform_indices = @transform_1, window_bounds = array<i64: 1, 32>}, {pipeline_mode = #tpu.pipeline_mode<synchronous>, transform_indices = @transform_2, window_bounds = array<i64: 1, 1>}, {transform_indices = @transform_3, window_bounds = array<i64: 8, 1>}]} {
    %c0 = arith.constant 0 : index
    %c0_0 = arith.constant 0 : index
    %0 = vector.load %arg1[%c0, %c0_0] : memref<8x32xf32, #tpu.memory_space<vmem>>, vector<8x32xf32>
    %c0_1 = arith.constant 0 : index
    %c0_2 = arith.constant 0 : index
    %1 = vector.load %arg2[%c0_1, %c0_2] : memref<1x32xf32, #tpu.memory_space<vmem>>, vector<1x32xf32>
    %2 = vector.broadcast %1 : vector<1x32xf32> to vector<8x32xf32>
    %3 = arith.mulf %0, %2 : vector<8x32xf32>
    %cst = arith.constant dense<0.000000e+00> : vector<8xf32>
    %4 = vector.multi_reduction <add>, %3, %cst [1] : vector<8x32xf32> to vector<8xf32>
    %5 = vector.shape_cast %4 : vector<8xf32> to vector<8x1xf32>
    %c0_3 = arith.constant 0 : index
    %c0_4 = arith.constant 0 : index
    %6 = vector.load %arg3[%c0_3, %c0_4] : memref<1x1xf32, #tpu.memory_space<vmem>>, vector<1x1xf32>
    %7 = vector.broadcast %6 : vector<1x1xf32> to vector<8x1xf32>
    %8 = arith.addf %5, %7 : vector<8x1xf32>
    %c0_5 = arith.constant 0 : index
    %c0_6 = arith.constant 0 : index
    %9 = vector.load %arg4[%c0_5, %c0_6] : memref<8x1xf32, #tpu.memory_space<vmem>>, vector<8x1xf32>
    tpu.vector_store %arg4[%c0_5, %c0_6], %8 {strides = array<i32>} : memref<8x1xf32, #tpu.memory_space<vmem>>, vector<8x1xf32>,
    return
  }
  func.func @transform_0(%arg0: i32) -> (i32, i32) {
    %c0_i32 = arith.constant 0 : i32
    %c0_i32_0 = arith.constant 0 : i32
    return %arg0, %c0_i32 : i32, i32
  }
  func.func @transform_1(%arg0: i32) -> (i32, i32) {
    %c0_i32 = arith.constant 0 : i32
    %c0_i32_0 = arith.constant 0 : i32
    %c0_i32_1 = arith.constant 0 : i32
    return %c0_i32, %c0_i32_0 : i32, i32
  }
  func.func @transform_2(%arg0: i32) -> (i32, i32) {
    %c0_i32 = arith.constant 0 : i32
    %c0_i32_0 = arith.constant 0 : i32
    %c0_i32_1 = arith.constant 0 : i32
    return %c0_i32, %c0_i32_0 : i32, i32
  }
  func.func @transform_3(%arg0: i32) -> (i32, i32) {
    %c0_i32 = arith.constant 0 : i32
    %c0_i32_0 = arith.constant 0 : i32
    return %arg0, %c0_i32 : i32, i32
  }
}

</mosaic_0001>

<bundles_post_ra>
// kernel: tpu_custom_call.1
= control target key start
LH: loop header
LB: loop body
LE: loop exit
PB: predicated region body
PF: predicated region fallthrough
CT: control target
= control target key end

     0   :  { %s125_s0 = inlined_call_operand.hbm [shape: f32[8,32], index: 0, kind: input, shape index: {}]   ;;  %s126_s1 = inlined_call_operand.vmem [shape: f32[1,32], index: 1, kind: input, shape index: {}]   ;;  %s127_s2 = inlined_call_operand.<no memory space> [shape: f32[1,1], index: 2, kind: input, shape index: {}]   ;;  %s128_s3 = inlined_call_operand.vmem [shape: f32[8,1], index: 3, kind: output, shape index: {}]  }
   0x1   :  { %v8_v0 = vstv %s127_s2 }
   0x2   :  { %9 = vst [vmem:[#allocation2] sm:$0x1] %v8_v0 }
   0x3   :  { %10 = vsyncpa [#allocation4], 0  ;;  %s83_s14 = smov [#allocation3]   ;;  %s59_s18 = scalar_lea.hbm %s125_s0, 128 }
   0x4   :  { %s17_s15 = sshll.u32 %s83_s14, 4  ;;  %p60_p0 = scmp.ne.s32.totalorder %s125_s0, %s59_s18  ;;  %s18_s15 = int_to_ptr.vmem [resolvable:$true] %s17_s15 }
   0x5   :  { %p63_p1 = scmp.lt.u32.totalorder %s59_s18, %s125_s0 }
   0x7   :  { %p65_p2 = pnand %p63_p1, %p60_p0 }
   0x9   :  { %68 = shalt.err (!%p65_p2)
}
   0xa   :  { %s69_s2 = scalar_lea.vmem %s18_s15, 128  ;;  %p74_p4 = scmp.lt.s32.totalorder %s18_s15, %s18_s15 }
   0xb   :  { %p70_p3 = scmp.ne.s32.totalorder %s18_s15, %s69_s2  ;;  %p75_p5 = scmp.lt.s32.totalorder %s69_s2, %s69_s2 }
   0xd   :  { %p76_p6 = por %p75_p5, %p74_p4 }
   0xf   :  { %p77_p7 = pnand %p76_p6, %p70_p3 }
  0x11   :  { %80 = shalt.err (!%p77_p7)
}
  0x12   :  { %20 = dma.hbm_to_vmem [thread:$0]  %s125_s0, 128, %s18_s15, [#allocation4]  }
  0x13   :  { %81 = dma.done.wait [#allocation4], 128  }
  0x14   :  { %82 = vsyncadd [#allocation4], 4294967168  ;;  %v28_v1 = vld [vmem:[#allocation3] sm:$0xff]  ;;  %v56_v2 = vld [vmem:[%s126_s1] ss:$0 sm:$0xff]  ;;  %vm37_vm0 = vcmask 261120  }
  0x15   :  { %v36_v3 = vmul.f32 %v56_v2, %v28_v1  ;;  %v57_v5 = vld [vmem:[#allocation2] ss:$0 sm:$0xff]  ;;  %vm49_vm1 = vcmask 7168  }
  0x17   :  { %v38_v4 = vsel %vm37_vm0, %v36_v3, 0.0 }
  0x18   :  { %39 = vadd.xlane.f32.xlu0 %v38_v4 }
  0xa5   :  { %v40_v6 = vpop.xlane.xlu0 %39 }
  0xa6   :  { %v48_v7 = vadd.f32 %v57_v5, %v40_v6 }
  0xa8   :  { %50 = vst.msk [vmem:[%s128_s3] sm:$0xff] %vm49_vm1, %v48_v7 }
  0xa9   :  { %55 = vsyncpa [#allocation4], 1 }

</bundles_post_ra>
